<compile_context>
chip_gen: v7x
topology: tpu7x:2x2x1
jax: 0.10.0
libtpu: 0.0.40
codegen_flags: <defaults>
</compile_context>

<pallas_src>
import math

import jax
import jax.numpy as jnp
from jax.experimental import pallas as pl
from jax.experimental.pallas import tpu as pltpu

N_MEMBERS = 5
LANE = 128


def _round_up(v, m):
    return ((v + m - 1) // m) * m


def fuzzy_gaussian_kernel(params_ref, x_ref, rep_ref, o_ref):
    """Gaussian membership + in-kernel repeat_interleave onto the lane axis.

    params_ref : SMEM (2,)  = [mu, -1/(2*sigma^2)]
    x_ref      : VMEM (tm, LANE)                input tile (caller dtype)
    rep_ref    : VMEM (LANE, LANE * n_members)  constant 0/1 interleave matrix (bf16)
    o_ref      : VMEM (tm, LANE * n_members)    interleaved output tile (caller dtype)
    """
    mu = params_ref[0]
    neg_half_inv_var = params_ref[1]

    x = x_ref[...].astype(jnp.float32)
    d = x - mu
    mf = jnp.exp(d * d * neg_half_inv_var)          # (tm, LANE) in [0,1], VPU + EUP

    rep = rep_ref[...]                              # bf16 0/1, one 1.0 per column

    # First (top-8-mantissa-bit) term: single bf16 MXU pass; each output
    # column picks exactly one product h1[i, c//n] * 1.0 -> exact.
    h1 = mf.astype(jnp.bfloat16)
    out = jnp.dot(h1, rep, preferred_element_type=jnp.float32)

    # For f32 (or wider) outputs add two residual terms so the reconstructed
    # value matches mf to <= ~1 ulp.  Each subtraction below is exact
    # (Sterbenz), so h1 + h2 + h3 carries the full f32 mantissa.
    if jnp.dtype(o_ref.dtype).itemsize >= 4:
        r1 = mf - h1.astype(jnp.float32)
        h2 = r1.astype(jnp.bfloat16)
        r2 = r1 - h2.astype(jnp.float32)
        h3 = r2.astype(jnp.bfloat16)
        out = out + jnp.dot(h2, rep, preferred_element_type=jnp.float32)
        out = out + jnp.dot(h3, rep, preferred_element_type=jnp.float32)

    o_ref[...] = out.astype(o_ref.dtype)


def fuzzy_function_forward(x, mu, sigma, n_members=N_MEMBERS, *, tm=4096):
    """Pallas implementation of FuzzyFunction(f='gaussian', n_members).forward."""
    orig_shape = x.shape
    orig_dtype = x.dtype
    total = math.prod(orig_shape)

    # Flatten to a lane-dense (M, 128) view.  Padding is a rare fallback.
    x_flat = jnp.ravel(x)
    pad = (-total) % LANE
    if pad:
        x_flat = jnp.pad(x_flat, (0, pad))
    M = x_flat.shape[0] // LANE
    x2 = x_flat.reshape(M, LANE)

    # Tile height: big tiles amortize per-step overhead (~0.35 us/step) but
    # keep >= ~4 grid steps for pipeline overlap + v7x megacore sharding, and
    # cap the double-buffered in+out footprint under the 32 MiB VMEM limit
    # (tm=4096 -> ~25 MiB for f32 output, ~14 MiB for bf16).
    tm = min(tm, max(256, pl.cdiv(M, 4)))
    tm = _round_up(tm, 32)            # sublane-tiling safe for f32/bf16/int8
    if tm >= M:
        tm = M                        # single full-extent block (always legal)
    grid = (pl.cdiv(M, tm),)

    # Scalar params, prefolded: [mu, -1/(2*sigma^2)]  (SMEM).
    mu_s = jnp.asarray(mu, jnp.float32).reshape(-1)[0]
    sg_s = jnp.asarray(sigma, jnp.float32).reshape(-1)[0]
    params = jnp.stack([mu_s, -0.5 / (sg_s * sg_s)])

    # Constant repeat-interleave matrix: R[j, j*n + k] = 1.0 (exact in bf16).
    cols = jnp.arange(LANE * n_members, dtype=jnp.int32)
    rows = jnp.arange(LANE, dtype=jnp.int32)
    rep = (cols[None, :] // n_members == rows[:, None]).astype(jnp.bfloat16)

    out = pl.pallas_call(
        fuzzy_gaussian_kernel,
        out_shape=jax.ShapeDtypeStruct((M, LANE * n_members), orig_dtype),
        grid_spec=pltpu.PrefetchScalarGridSpec(
            num_scalar_prefetch=0,
            grid=grid,
            in_specs=[
                pl.BlockSpec(memory_space=pltpu.MemorySpace.SMEM),          # params
                pl.BlockSpec((tm, LANE), lambda i: (i, 0)),                 # x tile
                pl.BlockSpec((LANE, LANE * n_members), lambda i: (0, 0)),   # R (fetched once)
            ],
            out_specs=pl.BlockSpec((tm, LANE * n_members), lambda i: (i, 0)),
        ),
        compiler_params=pltpu.CompilerParams(
            dimension_semantics=("parallel",),
            # v5e's default scoped VMEM is 16 MiB; tm=4096 needs ~25 MiB, so
            # request 32 MiB explicitly (also the scoped default on v6e/v7x,
            # and safely under v7x's 64 MiB physical VMEM).
            vmem_limit_bytes=32 * 1024 * 1024,
        ),
    )(params, x2, rep)

    # Flat output is already element-interleaved -> only a free reshape left.
    out_flat = out.reshape(-1)
    if pad:
        out_flat = out_flat[: total * n_members]
    return out_flat.reshape(*orig_shape, n_members)


def reference_forward(x, mu, sigma, n_members=N_MEMBERS):
    """Pure-JAX reference mirroring the PyTorch semantics."""
    mf = jnp.exp(-jnp.square(x - mu[0]) / (2.0 * sigma[0] * sigma[0]))
    return jnp.broadcast_to(mf[..., None], (*x.shape, n_members))


if __name__ == "__main__":
    key = jax.random.PRNGKey(0)
    B, C, H, W = 2, 4, 16, 16
    x = jax.random.normal(key, (B, C, H, W), dtype=jnp.float32)

    # Deterministic parameters of the Gaussian membership function
    # (elementwise_affine scalars of the module's `self.f`).
    mu = jnp.zeros((1,), dtype=jnp.float32)
    sigma = jnp.ones((1,), dtype=jnp.float32)

    y = jax.block_until_ready(fuzzy_function_forward(x, mu, sigma))
    y_ref = reference_forward(x, mu, sigma)

    assert y.shape == (B, C, H, W, N_MEMBERS), y.shape
    assert y.dtype == x.dtype, y.dtype
    assert jnp.allclose(y, y_ref, atol=1e-6, rtol=1e-6), float(
        jnp.max(jnp.abs(y - y_ref))
    )

    print("KERNEL_OK")
</pallas_src>

<mosaic_0001>
module attributes {stable_mosaic.version = 11 : i64} {
  func.func @fuzzy_gaussian_kernel(%arg0: i32, %arg1: memref<2xf32, #tpu.memory_space<smem>>, %arg2: memref<16x128xf32, #tpu.memory_space<vmem>>, %arg3: memref<128x640xbf16, #tpu.memory_space<vmem>>, %arg4: memref<16x640xf32, #tpu.memory_space<vmem>>) attributes {dimension_semantics = [#tpu.dimension_semantics<parallel>], iteration_bounds = array<i64: 1>, scalar_prefetch = 0 : i64, scratch_operands = 0 : i64, tpu.core_type = #tpu.core_type<tc>, window_params = [{transform_indices = @transform_0, window_bounds = array<i64: 2>}, {transform_indices = @transform_1, window_bounds = array<i64: 16, 128>}, {pipeline_mode = #tpu.pipeline_mode<synchronous>, transform_indices = @transform_2, window_bounds = array<i64: 128, 640>}, {transform_indices = @transform_3, window_bounds = array<i64: 16, 640>}]} {
    %c0 = arith.constant 0 : index
    %0 = memref.load %arg1[%c0] : memref<2xf32, #tpu.memory_space<smem>>
    %c1 = arith.constant 1 : index
    %1 = memref.load %arg1[%c1] : memref<2xf32, #tpu.memory_space<smem>>
    %c0_0 = arith.constant 0 : index
    %c0_1 = arith.constant 0 : index
    %2 = vector.load %arg2[%c0_0, %c0_1] : memref<16x128xf32, #tpu.memory_space<vmem>>, vector<16x128xf32>
    %3 = vector.broadcast %0 : f32 to vector<16x128xf32>
    %4 = arith.subf %2, %3 : vector<16x128xf32>
    %5 = arith.mulf %4, %4 : vector<16x128xf32>
    %6 = vector.broadcast %1 : f32 to vector<16x128xf32>
    %7 = arith.mulf %5, %6 : vector<16x128xf32>
    %8 = math.exp %7 : vector<16x128xf32>
    %c0_2 = arith.constant 0 : index
    %c0_3 = arith.constant 0 : index
    %9 = vector.load %arg3[%c0_2, %c0_3] : memref<128x640xbf16, #tpu.memory_space<vmem>>, vector<128x640xbf16>
    %10 = arith.truncf %8 : vector<16x128xf32> to vector<16x128xbf16>
    %cst = arith.constant dense<0.000000e+00> : vector<16x640xf32>
    %11 = tpu.matmul %10, %9, %cst {dimension_numbers = #tpu.dot_dimension_numbers<[1], [0], [0], [1], [0, 0, 1, 1], [], []>} : vector<16x128xbf16>, vector<128x640xbf16>, vector<16x640xf32> -> vector<16x640xf32>
    %12 = arith.extf %10 : vector<16x128xbf16> to vector<16x128xf32>
    %13 = arith.subf %8, %12 : vector<16x128xf32>
    %14 = arith.truncf %13 : vector<16x128xf32> to vector<16x128xbf16>
    %15 = arith.extf %14 : vector<16x128xbf16> to vector<16x128xf32>
    %16 = arith.subf %13, %15 : vector<16x128xf32>
    %17 = arith.truncf %16 : vector<16x128xf32> to vector<16x128xbf16>
    %cst_4 = arith.constant dense<0.000000e+00> : vector<16x640xf32>
    %18 = tpu.matmul %14, %9, %cst_4 {dimension_numbers = #tpu.dot_dimension_numbers<[1], [0], [0], [1], [0, 0, 1, 1], [], []>} : vector<16x128xbf16>, vector<128x640xbf16>, vector<16x640xf32> -> vector<16x640xf32>
    %19 = arith.addf %11, %18 : vector<16x640xf32>
    %cst_5 = arith.constant dense<0.000000e+00> : vector<16x640xf32>
    %20 = tpu.matmul %17, %9, %cst_5 {dimension_numbers = #tpu.dot_dimension_numbers<[1], [0], [0], [1], [0, 0, 1, 1], [], []>} : vector<16x128xbf16>, vector<128x640xbf16>, vector<16x640xf32> -> vector<16x640xf32>
    %21 = arith.addf %19, %20 : vector<16x640xf32>
    %c0_6 = arith.constant 0 : index
    %c0_7 = arith.constant 0 : index
    %22 = vector.load %arg4[%c0_6, %c0_7] : memref<16x640xf32, #tpu.memory_space<vmem>>, vector<16x640xf32>
    tpu.vector_store %arg4[%c0_6, %c0_7], %21 {strides = array<i32>} : memref<16x640xf32, #tpu.memory_space<vmem>>, vector<16x640xf32>,
    return
  }
  func.func @transform_0(%arg0: i32) -> i32 {
    %c0_i32 = arith.constant 0 : i32
    %c0_i32_0 = arith.constant 0 : i32
    return %c0_i32 : i32
  }
  func.func @transform_1(%arg0: i32) -> (i32, i32) {
    %c0_i32 = arith.constant 0 : i32
    %c0_i32_0 = arith.constant 0 : i32
    return %arg0, %c0_i32 : i32, i32
  }
  func.func @transform_2(%arg0: i32) -> (i32, i32) {
    %c0_i32 = arith.constant 0 : i32
    %c0_i32_0 = arith.constant 0 : i32
    %c0_i32_1 = arith.constant 0 : i32
    return %c0_i32, %c0_i32_0 : i32, i32
  }
  func.func @transform_3(%arg0: i32) -> (i32, i32) {
    %c0_i32 = arith.constant 0 : i32
    %c0_i32_0 = arith.constant 0 : i32
    return %arg0, %c0_i32 : i32, i32
  }
}

</mosaic_0001>

<bundles_post_ra>
// kernel: tpu_custom_call.1
= control target key start
LH: loop header
LB: loop body
LE: loop exit
PB: predicated region body
PF: predicated region fallthrough
CT: control target
= control target key end

     0   :  { %8 = vsyncpa [#allocation5], 0  ;;  %s1399_s0 = inlined_call_operand.hbm [shape: f32[2], index: 0, kind: input, shape index: {}]   ;;  %s1400_s1 = inlined_call_operand.hbm [shape: f32[16,128], index: 1, kind: input, shape index: {}]   ;;  %s1401_s2 = inlined_call_operand.hbm [shape: bf16[128,640], index: 2, kind: input, shape index: {}]   ;;  %s1402_s3 = inlined_call_operand.hbm [shape: f32[16,640], index: 3, kind: output, shape index: {}]  }
   0x1   :  { %9 = vsyncpa [#allocation3], 0 }
   0x2   :  { %10 = vsyncpa [#allocation8], 0 }
   0x3   :  { %11 = vsyncpa [#allocation4], 0  ;;  %s983_s14 = scalar_lea.hbm %s1399_s0, 16 }
   0x4   :  { %p984_p0 = scmp.ne.s32.totalorder %s1399_s0, %s983_s14  ;;  %p987_p1 = scmp.lt.u32.totalorder %s983_s14, %s1399_s0 }
   0x6   :  { %p989_p2 = pnand %p987_p1, %p984_p0 }
   0x8   :  { %992 = shalt.err (!%p989_p2)
}
   0x9   :  { %s1067_s19 = smov [#allocation2]   ;;  %s1068_s22 = smov [#allocation6]  }
   0xa   :  { %19 = dma.hbm_to_smem %s1399_s0, 16, %s1067_s19, [#allocation5]  }
   0xb   :  { %s25_s23 = sshll.u32 %s1068_s22, 4  ;;  %s993_s26 = scalar_lea.hbm %s1400_s1, 256  ;;  %s26_s23 = int_to_ptr.vmem [resolvable:$true] %s25_s23 }
   0xc   :  { %p994_p3 = scmp.ne.s32.totalorder %s1400_s1, %s993_s26  ;;  %p997_p4 = scmp.lt.u32.totalorder %s993_s26, %s1400_s1 }
   0xe   :  { %p999_p5 = pnand %p997_p4, %p994_p3 }
  0x10   :  { %1002 = shalt.err (!%p999_p5)
}
  0x11   :  { %s1003_s4 = scalar_lea.vmem %s26_s23, 256  ;;  %p1008_p7 = scmp.lt.s32.totalorder %s26_s23, %s26_s23 }
  0x12   :  { %p1004_p6 = scmp.ne.s32.totalorder %s26_s23, %s1003_s4  ;;  %p1009_p8 = scmp.lt.s32.totalorder %s1003_s4, %s1003_s4 }
  0x14   :  { %p1010_p9 = por %p1009_p8, %p1008_p7 }
  0x16   :  { %p1011_p10 = pnand %p1010_p9, %p1004_p6 }
  0x18   :  { %1014 = shalt.err (!%p1011_p10)
}
  0x19   :  { %s1069_s0 = smov 128   ;;  %s1070_s5 = smov 8  }
  0x1a   :  { %31 = dma.hbm_to_vmem [thread:$0]  %s1400_s1, 256, %s26_s23, [#allocation3], %s1069_s0, %s1069_s0, %s1070_s5  }
  0x1b   :  { %s1071_s8 = smov [#allocation7]   ;;  %s1015_s12 = scalar_lea.hbm %s1401_s2, 5120 }
  0x1c   :  { %s37_s9 = sshll.u32 %s1071_s8, 4  ;;  %p1016_p11 = scmp.ne.s32.totalorder %s1401_s2, %s1015_s12  ;;  %s38_s9 = int_to_ptr.vmem [resolvable:$true] %s37_s9 }
  0x1d   :  { %p1019_p12 = scmp.lt.u32.totalorder %s1015_s12, %s1401_s2 }
  0x1f   :  { %p1021_p13 = pnand %p1019_p12, %p1016_p11 }
  0x21   :  { %1024 = shalt.err (!%p1021_p13)
}
  0x22   :  { %s1025_s17 = scalar_lea.vmem %s38_s9, 5120  ;;  %p1030_p1 = scmp.lt.s32.totalorder %s38_s9, %s38_s9 }
  0x23   :  { %p1026_p0 = scmp.ne.s32.totalorder %s38_s9, %s1025_s17  ;;  %p1031_p2 = scmp.lt.s32.totalorder %s1025_s17, %s1025_s17 }
  0x25   :  { %p1032_p3 = por %p1031_p2, %p1030_p1 }
  0x27   :  { %p1033_p4 = pnand %p1032_p3, %p1026_p0 }
  0x29   :  { %1036 = shalt.err (!%p1033_p4)
}
  0x2a   :  { %s1072_s1 = smov 320   ;;  %s1073_s18 = smov 20  }
  0x2b   :  { %43 = dma.hbm_to_vmem [thread:$0]  %s1401_s2, 5120, %s38_s9, [#allocation8], %s1072_s1, %s1072_s1, %s1073_s18  }
  0x2c   :  { %1059 = dma.done.wait [#allocation5], 16  }
  0x2d   :  { %1060 = vsyncadd [#allocation5], 4294967280 }
  0x2e   :  { %1061 = dma.done.wait [#allocation3], 256  }
  0x2f   :  { %1062 = vsyncadd [#allocation3], 4294967040 }
  0x30   :  { %1063 = dma.done.wait [#allocation8], 5120  }
  0x31   :  { %1064 = vsyncadd [#allocation8], 4294962176 }
  0x32   :  { %53 = sfence }
  0x33   :  { %v1136_v0 = vld [vmem:[#allocation7 + $0x4] ss:$20 sps:$4 sm:$0xff]   ;;  %v1074_v1 = vmov 0.0   ;;  %vm1075_vm0 = vmmov 0   ;;  %v1144_v3 = vld [vmem:[#allocation7] ss:$20 sps:$4 sm:$0xff]  }
  0x34   :  { %826 = vmatprep.subr.bf16.mxu0 %v1074_v1  ;;  %v1139_v2 = vld [vmem:[#allocation7 + $0x10] ss:$20 sps:$4 sm:$0xff]   ;;  %842 = vmatprep.mubr.msk.bf16.mxu0 %vm1075_vm0, %v1074_v1  ;;  %v1147_v4 = vld [vmem:[#allocation7 + $0x2c] ss:$20 sps:$4 sm:$0xff]   ;;  %v1076_v5 = vmov 0   ;;  %s55_s2 = sld [smem:[#allocation2]] }
  0x35   :  { %338 = vmatprep.subr.bf16.mxu1 %v1136_v0  ;;  %827 = vmatpush3.bf16.msra.mxu0 %v1139_v2  ;;  %v1152_v6 = vld [vmem:[#allocation7 + $0x38] ss:$20 sps:$4 sm:$0xff]   ;;  %v1154_v7 = vld [vmem:[#allocation7 + $0x28] ss:$20 sps:$4 sm:$0xff]   ;;  %v1160_v9 = vld [vmem:[#allocation7 + $0x60] ss:$20 sps:$4 sm:$0xff]  }
  0x36   :  { %370 = vmatprep.mubr.bf16.mxu1 %v1076_v5  ;;  %339 = vmatpush1.bf16.msra.mxu1 %v1144_v3  ;;  %v1157_v8 = vld [vmem:[#allocation7 + $0x54] ss:$20 sps:$4 sm:$0xff]   ;;  %v1164_v10 = vld [vmem:[#allocation7 + $0x50] ss:$20 sps:$4 sm:$0xff]   ;;  %v1174_v13 = vld [vmem:[#allocation7 + $0x78] ss:$20 sps:$4 sm:$0xff]  }
  0x37   :  { %828 = vmatprep.subr.bf16.mxu0 %v1074_v1  ;;  %340 = vmatprep.subr.bf16.mxu1 %v1147_v4  ;;  %v1167_v11 = vld [vmem:[#allocation7 + $0x7c] ss:$20 sps:$4 sm:$0xff]   ;;  %v1177_v14 = vld [vmem:[#allocation7 + $0xa4] ss:$20 sps:$4 sm:$0xff]   ;;  %s1179_s21 = sld [smem:[#allocation2 + $0x1]]  ;;  %s1077_s22 = smov [#allocation9]  }
  0x38   :  { %v1170_v12 = vld [vmem:[#allocation7 + $0x88] ss:$20 sps:$4 sm:$0xff]   ;;  %v1182_v15 = vld [vmem:[#allocation7 + $0xb0] ss:$20 sps:$4 sm:$0xff]   ;;  %v1186_v16 = vld [vmem:[#allocation7 + $0xa0] ss:$20 sps:$4 sm:$0xff]  }
  0x39   :  { %829 = vmatpush3.bf16.msra.mxu0 %v1152_v6  ;;  %v1189_v17 = vld [vmem:[#allocation7 + $0xcc] ss:$20 sps:$4 sm:$0xff]   ;;  %v1194_v20 = vld [vmem:[#allocation7 + $0xc8] ss:$20 sps:$4 sm:$0xff]   ;;  %v57_v21 = vld [vmem:[#allocation6] sm:$0xff]  ;;  %s744_s23 = sshll.u32 %s1077_s22, 4  ;;  %s745_s23 = int_to_ptr.vmem [resolvable:$true] %s744_s23 }
  0x3a   :  { %341 = vmatpush1.bf16.msra.mxu1 %v1154_v7  ;;  %830 = vmatprep.subr.bf16.mxu0 %v1074_v1  ;;  %v59_v18 = vstv %s55_s2  ;;  %v1192_v19 = vld [vmem:[#allocation7 + $0xd8] ss:$20 sps:$4 sm:$0xff]   ;;  %v1199_v23 = vld [vmem:[#allocation7 + $0xf4] ss:$20 sps:$4 sm:$0xff]   ;;  %v1207_v30 = vld [vmem:[#allocation7 + $0xf0] ss:$20 sps:$4 sm:$0xff]   ;;  %p1042_p6 = scmp.lt.s32.totalorder %s745_s23, %s745_s23 }
  0x3b   :  { %342 = vmatprep.subr.bf16.mxu1 %v1157_v8  ;;  %v58_v22 = vld [vmem:[#allocation6 + $0x8] sm:$0xff]  ;;  %v60_v24 = vsub.f32 %v57_v21, %v59_v18  ;;  %v1203_v27 = vld [vmem:[#allocation7 + $0x100] ss:$20 sps:$4 sm:$0xff]   ;;  %v1236_v51 = vld [vmem:[#allocation7 + $0x30] ss:$20 sps:$4 sm:$0xff]   ;;  %s1037_s24 = scalar_lea.vmem %s745_s23, 1280 }
  0x3c   :  { %v61_v25 = vsub.f32 %v58_v22, %v59_v18  ;;  %v1210_v31 = vld [vmem:[#allocation7 + $0x11c] ss:$20 sps:$4 sm:$0xff]   ;;  %v1217_v37 = vld [vmem:[#allocation7 + $0x118] ss:$20 sps:$4 sm:$0xff]   ;;  %v1232_v48 = vld [vmem:[#allocation7 + $0x34] ss:$20 sps:$4 sm:$0xff]   ;;  %p1038_p5 = scmp.ne.s32.totalorder %s745_s23, %s1037_s24  ;;  %p1043_p7 = scmp.lt.s32.totalorder %s1037_s24, %s1037_s24 }
  0x3d   :  { %831 = vmatpush3.bf16.msra.mxu0 %v1160_v9  ;;  %v64_v26 = vstv %s1179_s21  ;;  %v62_v28 = vmul.f32 %v60_v24, %v60_v24  ;;  %v1213_v34 = vld [vmem:[#allocation7 + $0x128] ss:$20 sps:$4 sm:$0xff]   ;;  %v1220_v38 = vld [vmem:[#allocation7 + $0xc] ss:$20 sps:$4 sm:$0xff]   ;;  %v1252_v57 = vld [vmem:[#allocation7 + $0x84] ss:$20 sps:$4 sm:$0xff]  }
  0x3e   :  { %343 = vmatpush1.bf16.msra.mxu1 %v1164_v10  ;;  %832 = vmatprep.subr.bf16.mxu0 %v1074_v1  ;;  %v63_v29 = vmul.f32 %v61_v25, %v61_v25  ;;  %v1230_v46 = vld [vmem:[#allocation7 + $0x8] ss:$20 sps:$4 sm:$0xff]   ;;  %v1248_v56 = vld [vmem:[#allocation7 + $0x58] ss:$20 sps:$4 sm:$0xff]   ;;  %v1256_v58 = vld [vmem:[#allocation7 + $0x80] ss:$20 sps:$4 sm:$0xff]   ;;  %p1044_p8 = por %p1043_p7, %p1042_p6 }
  0x3f   :  { %344 = vmatprep.subr.bf16.mxu1 %v1167_v11  ;;  %v65_v32 = vmul.f32 %v64_v26, %v62_v28  ;;  %v1240_v52 = vld [vmem:[#allocation7 + $0x5c] ss:$20 sps:$4 sm:$0xff]   ;;  %v1260_v59 = vld [vmem:[#allocation7 + $0xac] ss:$20 sps:$4 sm:$0xff]   ;;  %v1268_v61 = vld [vmem:[#allocation7 + $0xd4] ss:$20 sps:$4 sm:$0xff]  }
  0x40   :  { %v66_v33 = vmul.f32 %v64_v26, %v63_v29  ;;  %v1264_v60 = vld [vmem:[#allocation7 + $0xa8] ss:$20 sps:$4 sm:$0xff]   ;;  %v1272_v62 = vld [vmem:[#allocation7 + $0xd0] ss:$20 sps:$4 sm:$0xff]   ;;  %v1280_v18 = vld [vmem:[#allocation7 + $0xf8] ss:$20 sps:$4 sm:$0xff]   ;;  %p1045_p9 = pnand %p1044_p8, %p1038_p5 }
  0x41   :  { %833 = vmatpush3.bf16.msra.mxu0 %v1170_v12  ;;  %v67_v35 = vmul.f32 1.442695, %v65_v32  ;;  %v1276_v63 = vld [vmem:[#allocation7 + $0xfc] ss:$20 sps:$4 sm:$0xff]   ;;  %v1284_v21 = vld [vmem:[#allocation7 + $0x124] ss:$20 sps:$4 sm:$0xff]  }
  0x42   :  { %345 = vmatpush1.bf16.msra.mxu1 %v1174_v13  ;;  %834 = vmatprep.subr.bf16.mxu0 %v1074_v1  ;;  %v69_v36 = vmul.f32 1.442695, %v66_v33  ;;  %v1288_v22 = vld [vmem:[#allocation7 + $0x120] ss:$20 sps:$4 sm:$0xff]  }
  0x43   :  { %346 = vmatprep.subr.bf16.mxu1 %v1177_v14  ;;  %979 = vpow2.f32 %v67_v35 }
  0x44   :  { %981 = vpow2.f32 %v69_v36 }
  0x45   :  { %835 = vmatpush3.bf16.msra.mxu0 %v1182_v15 }
  0x46   :  { %347 = vmatpush1.bf16.msra.mxu1 %v1186_v16  ;;  %836 = vmatprep.subr.bf16.mxu0 %v1074_v1 }
  0x47   :  { %348 = vmatprep.subr.bf16.mxu1 %v1189_v17 }
  0x49   :  { %837 = vmatpush3.bf16.msra.mxu0 %v1192_v19 }
  0x4a   :  { %349 = vmatpush1.bf16.msra.mxu1 %v1194_v20  ;;  %838 = vmatprep.subr.bf16.mxu0 %v1074_v1 }
  0x4b   :  { %350 = vmatprep.subr.bf16.mxu1 %v1199_v23 }
  0x4d   :  { %839 = vmatpush3.bf16.msra.mxu0 %v1203_v27  ;;  %v980_v39 = vpop.eup %979 }
  0x4e   :  { %351 = vmatpush1.bf16.msra.mxu1 %v1207_v30  ;;  %840 = vmatprep.subr.bf16.mxu0 %v1074_v1  ;;  %v982_v40 = vpop.eup %981 }
  0x4f   :  { %352 = vmatprep.subr.bf16.mxu1 %v1210_v31  ;;  %v1226_v41 = vpack.c.bf16 %v982_v40, %v980_v39 }
  0x51   :  { %841 = vmatpush3.bf16.msra.mxu0 %v1213_v34  ;;  %v120_v42 = vunpack.c.l.bf16 %v1226_v41  ;;  %v121_v43 = vunpack.c.h.bf16 %v1226_v41 }
  0x52   :  { %353 = vmatpush1.bf16.msra.mxu1 %v1217_v37  ;;  %465 = vmatprep.subr.bf16.mxu0 %v1136_v0 }
  0x53   :  { %381 = vmatprep.subr.bf16.mxu1 %v1220_v38  ;;  %v122_v44 = vsub.f32 %v980_v39, %v120_v42  ;;  %v123_v45 = vsub.f32 %v982_v40, %v121_v43 }
  0x55   :  { %v124_v47 = vpack.c.bf16 %v123_v45, %v122_v44 }
  0x57   :  { %843 = vmatmul.mubr.bf16.vlgmr.msra.gmra.mrb[0].mxu0 %v124_v47  ;;  %371 = vmatmul.mubr.bf16.vlgmr.msra.gmra.mrb[0].mxu1 %v124_v47  ;;  %v125_v49 = vunpack.c.l.bf16 %v124_v47  ;;  %v126_v50 = vunpack.c.h.bf16 %v124_v47 }
  0x58   :  { %466 = vmatpush1.bf16.msra.mxu0 %v1144_v3  ;;  %382 = vmatpush1.bf16.msra.mxu1 %v1230_v46 }
  0x59   :  { %467 = vmatprep.subr.bf16.mxu0 %v1147_v4  ;;  %383 = vmatprep.subr.bf16.mxu1 %v1232_v48  ;;  %v127_v53 = vsub.f32 %v122_v44, %v125_v49  ;;  %v128_v54 = vsub.f32 %v123_v45, %v126_v50 }
  0x5a   :  { %497 = vmatprep.mubr.bf16.mxu0 %v1076_v5  ;;  %413 = vmatprep.mubr.bf16.mxu1 %v1076_v5 }
  0x5b   :  { %v1244_v55 = vpack.c.bf16 %v128_v54, %v127_v53 }
  0x5c   :  { %468 = vmatpush1.bf16.msra.mxu0 %v1154_v7  ;;  %384 = vmatpush1.bf16.msra.mxu1 %v1236_v51 }
  0x5d   :  { %469 = vmatprep.subr.bf16.mxu0 %v1157_v8  ;;  %385 = vmatprep.subr.bf16.mxu1 %v1240_v52 }
  0x60   :  { %470 = vmatpush1.bf16.msra.mxu0 %v1164_v10  ;;  %386 = vmatpush1.bf16.msra.mxu1 %v1248_v56 }
  0x61   :  { %471 = vmatprep.subr.bf16.mxu0 %v1167_v11  ;;  %387 = vmatprep.subr.bf16.mxu1 %v1252_v57 }
  0x64   :  { %472 = vmatpush1.bf16.msra.mxu0 %v1174_v13  ;;  %388 = vmatpush1.bf16.msra.mxu1 %v1256_v58 }
  0x65   :  { %473 = vmatprep.subr.bf16.mxu0 %v1177_v14  ;;  %389 = vmatprep.subr.bf16.mxu1 %v1260_v59 }
  0x68   :  { %474 = vmatpush1.bf16.msra.mxu0 %v1186_v16  ;;  %390 = vmatpush1.bf16.msra.mxu1 %v1264_v60 }
  0x69   :  { %475 = vmatprep.subr.bf16.mxu0 %v1189_v17  ;;  %391 = vmatprep.subr.bf16.mxu1 %v1268_v61 }
  0x6c   :  { %476 = vmatpush1.bf16.msra.mxu0 %v1194_v20  ;;  %392 = vmatpush1.bf16.msra.mxu1 %v1272_v62 }
  0x6d   :  { %477 = vmatprep.subr.bf16.mxu0 %v1199_v23  ;;  %393 = vmatprep.subr.bf16.mxu1 %v1276_v63 }
  0x70   :  { %478 = vmatpush1.bf16.msra.mxu0 %v1207_v30  ;;  %394 = vmatpush1.bf16.msra.mxu1 %v1280_v18 }
  0x71   :  { %479 = vmatprep.subr.bf16.mxu0 %v1210_v31  ;;  %395 = vmatprep.subr.bf16.mxu1 %v1284_v21 }
  0x74   :  { %480 = vmatpush1.bf16.msra.mxu0 %v1217_v37  ;;  %396 = vmatpush1.bf16.msra.mxu1 %v1288_v22 }
  0x75   :  { %846 = vmatprep.subr.bf16.mxu0 %v1074_v1  ;;  %508 = vmatprep.subr.bf16.mxu1 %v1220_v38 }
  0x77   :  { %498 = vmatmul.mubr.bf16.vlgmr.msra.gmra.mrb[4].mxu0 %v1226_v41  ;;  %414 = vmatmul.mubr.bf16.vlgmr.msra.gmra.mrb[4].mxu1 %v124_v47 }
  0x78   :  { %847 = vmatpush3.bf16.msra.mxu0 %v1139_v2  ;;  %509 = vmatpush1.bf16.msra.mxu1 %v1230_v46 }
  0x79   :  { %848 = vmatprep.subr.bf16.mxu0 %v1074_v1  ;;  %510 = vmatprep.subr.bf16.mxu1 %v1232_v48 }
  0x7a   :  { %862 = vmatprep.mubr.msk.bf16.mxu0 %vm1075_vm0, %v1074_v1  ;;  %540 = vmatprep.mubr.bf16.mxu1 %v1076_v5 }
  0x7c   :  { %849 = vmatpush3.bf16.msra.mxu0 %v1152_v6  ;;  %511 = vmatpush1.bf16.msra.mxu1 %v1236_v51 }
  0x7d   :  { %850 = vmatprep.subr.bf16.mxu0 %v1074_v1  ;;  %512 = vmatprep.subr.bf16.mxu1 %v1240_v52 }
  0x80   :  { %851 = vmatpush3.bf16.msra.mxu0 %v1160_v9  ;;  %513 = vmatpush1.bf16.msra.mxu1 %v1248_v56 }
  0x81   :  { %852 = vmatprep.subr.bf16.mxu0 %v1074_v1  ;;  %514 = vmatprep.subr.bf16.mxu1 %v1252_v57 }
  0x84   :  { %853 = vmatpush3.bf16.msra.mxu0 %v1170_v12  ;;  %515 = vmatpush1.bf16.msra.mxu1 %v1256_v58 }
  0x85   :  { %854 = vmatprep.subr.bf16.mxu0 %v1074_v1  ;;  %516 = vmatprep.subr.bf16.mxu1 %v1260_v59 }
  0x88   :  { %855 = vmatpush3.bf16.msra.mxu0 %v1182_v15  ;;  %517 = vmatpush1.bf16.msra.mxu1 %v1264_v60 }
  0x89   :  { %856 = vmatprep.subr.bf16.mxu0 %v1074_v1  ;;  %518 = vmatprep.subr.bf16.mxu1 %v1268_v61 }
  0x8c   :  { %857 = vmatpush3.bf16.msra.mxu0 %v1192_v19  ;;  %519 = vmatpush1.bf16.msra.mxu1 %v1272_v62 }
  0x8d   :  { %858 = vmatprep.subr.bf16.mxu0 %v1074_v1  ;;  %520 = vmatprep.subr.bf16.mxu1 %v1276_v63 }
  0x90   :  { %859 = vmatpush3.bf16.msra.mxu0 %v1203_v27  ;;  %521 = vmatpush1.bf16.msra.mxu1 %v1280_v18 }
  0x91   :  { %860 = vmatprep.subr.bf16.mxu0 %v1074_v1  ;;  %522 = vmatprep.subr.bf16.mxu1 %v1284_v21 }
  0x94   :  { %861 = vmatpush3.bf16.msra.mxu0 %v1213_v34  ;;  %523 = vmatpush1.bf16.msra.mxu1 %v1288_v22 }
  0x95   :  { %592 = vmatprep.subr.bf16.mxu0 %v1136_v0  ;;  %635 = vmatprep.subr.bf16.mxu1 %v1220_v38 }
  0x97   :  { %863 = vmatmul.mubr.bf16.vlgmr.msra.gmra.mrb[0].mxu0 %v1226_v41  ;;  %541 = vmatmul.mubr.bf16.vlgmr.msra.gmra.mrb[4].mxu1 %v1226_v41 }
  0x98   :  { %593 = vmatpush1.bf16.msra.mxu0 %v1144_v3  ;;  %636 = vmatpush1.bf16.msra.mxu1 %v1230_v46 }
  0x99   :  { %594 = vmatprep.subr.bf16.mxu0 %v1147_v4  ;;  %637 = vmatprep.subr.bf16.mxu1 %v1232_v48 }
  0x9a   :  { %624 = vmatprep.mubr.bf16.mxu0 %v1076_v5  ;;  %667 = vmatprep.mubr.bf16.mxu1 %v1076_v5 }
  0x9c   :  { %595 = vmatpush1.bf16.msra.mxu0 %v1154_v7  ;;  %638 = vmatpush1.bf16.msra.mxu1 %v1236_v51 }
  0x9d   :  { %596 = vmatprep.subr.bf16.mxu0 %v1157_v8  ;;  %639 = vmatprep.subr.bf16.mxu1 %v1240_v52 }
  0xa0   :  { %597 = vmatpush1.bf16.msra.mxu0 %v1164_v10  ;;  %640 = vmatpush1.bf16.msra.mxu1 %v1248_v56 }
  0xa1   :  { %598 = vmatprep.subr.bf16.mxu0 %v1167_v11  ;;  %641 = vmatprep.subr.bf16.mxu1 %v1252_v57 }
  0xa4   :  { %599 = vmatpush1.bf16.msra.mxu0 %v1174_v13  ;;  %642 = vmatpush1.bf16.msra.mxu1 %v1256_v58 }
  0xa5   :  { %600 = vmatprep.subr.bf16.mxu0 %v1177_v14  ;;  %643 = vmatprep.subr.bf16.mxu1 %v1260_v59 }
  0xa8   :  { %601 = vmatpush1.bf16.msra.mxu0 %v1186_v16  ;;  %644 = vmatpush1.bf16.msra.mxu1 %v1264_v60 }
  0xa9   :  { %602 = vmatprep.subr.bf16.mxu0 %v1189_v17  ;;  %645 = vmatprep.subr.bf16.mxu1 %v1268_v61 }
  0xac   :  { %603 = vmatpush1.bf16.msra.mxu0 %v1194_v20  ;;  %646 = vmatpush1.bf16.msra.mxu1 %v1272_v62 }
  0xad   :  { %604 = vmatprep.subr.bf16.mxu0 %v1199_v23  ;;  %647 = vmatprep.subr.bf16.mxu1 %v1276_v63 }
  0xb0   :  { %605 = vmatpush1.bf16.msra.mxu0 %v1207_v30  ;;  %648 = vmatpush1.bf16.msra.mxu1 %v1280_v18 }
  0xb1   :  { %606 = vmatprep.subr.bf16.mxu0 %v1210_v31  ;;  %649 = vmatprep.subr.bf16.mxu1 %v1284_v21 }
  0xb4   :  { %607 = vmatpush1.bf16.msra.mxu0 %v1217_v37  ;;  %650 = vmatpush1.bf16.msra.mxu1 %v1288_v22 }
  0xb5   :  { %866 = vmatprep.subr.bf16.mxu0 %v1074_v1 }
  0xb7   :  { %625 = vmatmul.mubr.bf16.vlgmr.msra.gmra.mrb[4].mxu0 %v1244_v55  ;;  %668 = vmatmul.mubr.bf16.vlgmr.msra.gmra.mrb[4].mxu1 %v1244_v55 }
  0xb8   :  { %867 = vmatpush3.bf16.msra.mxu0 %v1139_v2  ;;  %882 = vmatprep.mubr.msk.bf16.mxu0 %vm1075_vm0, %v1074_v1 }
  0xb9   :  { %868 = vmatprep.subr.bf16.mxu0 %v1074_v1 }
  0xbc   :  { %869 = vmatpush3.bf16.msra.mxu0 %v1152_v6 }
  0xbd   :  { %870 = vmatprep.subr.bf16.mxu0 %v1074_v1 }
  0xc0   :  { %871 = vmatpush3.bf16.msra.mxu0 %v1160_v9 }
  0xc1   :  { %872 = vmatprep.subr.bf16.mxu0 %v1074_v1 }
  0xc4   :  { %873 = vmatpush3.bf16.msra.mxu0 %v1170_v12 }
  0xc5   :  { %874 = vmatprep.subr.bf16.mxu0 %v1074_v1 }
  0xc8   :  { %875 = vmatpush3.bf16.msra.mxu0 %v1182_v15 }
  0xc9   :  { %876 = vmatprep.subr.bf16.mxu0 %v1074_v1 }
  0xcc   :  { %877 = vmatpush3.bf16.msra.mxu0 %v1192_v19 }
  0xcd   :  { %878 = vmatprep.subr.bf16.mxu0 %v1074_v1 }
  0xd0   :  { %879 = vmatpush3.bf16.msra.mxu0 %v1203_v27 }
  0xd1   :  { %880 = vmatprep.subr.bf16.mxu0 %v1074_v1 }
  0xd4   :  { %881 = vmatpush3.bf16.msra.mxu0 %v1213_v34 }
  0xd7   :  { %883 = vmatmul.mubr.bf16.vlgmr.msra.gmra.mrb[0].mxu0 %v1244_v55 }
 0x12a   :  { %v372_v0 = vpop.f32.mrb[0].mxu1 }
 0x12b   :  { %v374_v2 = vpop.f32.mrb[1].mxu1 }
 0x12c   :  { %v376_v3 = vpop.f32.mrb[2].mxu1 }
 0x12d   :  { %v378_v4 = vpop.f32.mrb[3].mxu1 }
 0x18a   :  { %v626_v5 = vpop.f32.mrb[4].mxu0  ;;  %v669_v6 = vpop.f32.mrb[4].mxu1 }
 0x18b   :  { %v886_v7 = vadd.f32 %v626_v5, %v372_v0  ;;  %v628_v8 = vpop.f32.mrb[5].mxu0  ;;  %731 = vst [vmem:[#allocation9 + $0x10] sm:$0xff] %v669_v6  ;;  %v671_v9 = vpop.f32.mrb[5].mxu1 }
 0x18c   :  { %v887_v10 = vadd.f32 %v628_v8, %v374_v2  ;;  %v630_v11 = vpop.f32.mrb[6].mxu0  ;;  %732 = vst [vmem:[#allocation9 + $0x18] sm:$0xff] %v671_v9  ;;  %v673_v12 = vpop.f32.mrb[6].mxu1 }
 0x18d   :  { %729 = vst [vmem:[#allocation9] sm:$0xff] %v886_v7  ;;  %v888_v1 = vadd.f32 %v630_v11, %v376_v3  ;;  %v632_v13 = vpop.f32.mrb[7].mxu0  ;;  %736 = vst [vmem:[#allocation9 + $0x38] sm:$0xff] %v673_v12  ;;  %v675_v14 = vpop.f32.mrb[7].mxu1 }
 0x18e   :  { %730 = vst [vmem:[#allocation9 + $0x8] sm:$0xff] %v887_v10  ;;  %v889_v15 = vadd.f32 %v632_v13, %v378_v4  ;;  %737 = vst [vmem:[#allocation9 + $0x40] sm:$0xff] %v675_v14 }
 0x18f   :  { %734 = vst [vmem:[#allocation9 + $0x28] sm:$0xff] %v888_v1 }
 0x190   :  { %735 = vst [vmem:[#allocation9 + $0x30] sm:$0xff] %v889_v15 }
 0x1aa   :  { %v712_v16 = vpop.f32.mrb[0].mxu0 }
 0x1ab   :  { %733 = vst [vmem:[#allocation9 + $0x20] sm:$0xff] %v712_v16  ;;  %v884_v17 = vpop.f32.mrb[1].mxu0 }
 0x1ac   :  { %v715_v19 = vpop.f32.mrb[2].mxu0 }
 0x1ad   :  { %738 = vst [vmem:[#allocation9 + $0x48] sm:$0xff] %v715_v19  ;;  %v885_v20 = vpop.f32.mrb[3].mxu0 }
 0x1ae   :  { %1048 = shalt.err (!%p1045_p9)
}
 0x1af   :  { %s1049_s27 = scalar_lea.hbm %s1402_s3, 1280 }
 0x1b0   :  { %p1050_p10 = scmp.ne.s32.totalorder %s1402_s3, %s1049_s27  ;;  %p1053_p11 = scmp.lt.u32.totalorder %s1049_s27, %s1402_s3 }
 0x1b2   :  { %p1055_p12 = pnand %p1053_p11, %p1050_p10 }
 0x1b4   :  { %1058 = shalt.err (!%p1055_p12)
}
 0x1b5   :  { %s1078_s0 = smov 640   ;;  %s1079_s5 = smov 40  }
 0x1b6   :  { %750 = dma.vmem_to_hbm [thread:$0]  %s745_s23, 1280, %s1402_s3, [#allocation4], %s1078_s0, %s1078_s0, %s1079_s5  }
 0x1b7   :  { %1065 = dma.done.wait [#allocation4], 1280  }
 0x1b8   :  { %1066 = vsyncadd [#allocation4], 4294966016 }
 0x1b9   :  { %754 = vsyncpa [#allocation3], 1 }
 0x1ba   :  { %755 = vsyncpa [#allocation8], 1 }
 0x1bb   :  { %756 = vsyncpa [#allocation4], 1 }
 0x1bc   :  { %757 = vsyncpa [#allocation5], 1 }

</bundles_post_ra>
